<compile_context>
chip_gen: v7x
topology: tpu7x:2x2x1
jax: 0.10.0
libtpu: 0.0.40
codegen_flags: <defaults>
</compile_context>

<pallas_src>
import jax
import jax.numpy as jnp
from jax.experimental import pallas as pl
from jax.experimental.pallas import tpu as pltpu


_SUBLANE = 8
_LANE = 128
_VMEM_BUDGET_BYTES = 8 * 1024 * 1024   # in+out, double-buffered footprint target
_MIN_GRID_STEPS = 4                    # keep the row axis shardable on v7x (2 TCs)


def _round_up(x, m):
    return (x + m - 1) // m * m


def _choose_tile_rows(n, d_in, d_out, itemsize):
    """Row-tile size: biggest that fits the VMEM budget (multiple of 8), but
    small enough that large N still produces >= _MIN_GRID_STEPS grid steps."""
    # Per-row VMEM cost with the lane dim padded up to a multiple of 128.
    row_bytes = _LANE * itemsize * (pl.cdiv(d_in, _LANE) + pl.cdiv(d_out, _LANE))
    budget_rows = _VMEM_BUDGET_BYTES // (2 * row_bytes)      # 2x: double buffering
    budget_rows = max(_SUBLANE, (budget_rows // _SUBLANE) * _SUBLANE)
    if n <= budget_rows:
        return n                                             # single full-extent block
    per_core = _round_up(pl.cdiv(n, _MIN_GRID_STEPS), _SUBLANE)
    return max(_SUBLANE, min(budget_rows, per_core))


# ----------------------------- Pallas kernels -------------------------------
# Kernels operate on natural-layout (tile_m, D) blocks: point index on the
# sublane axis, coordinate index on the lane axis.  Result is built as one
# value and written with a single full-tile store.

def _azimuthal_kernel(shift_ref, x_ref, o_ref):
    d = x_ref.shape[-1]
    x = x_ref[...]
    first = jnp.sqrt(x[:, 0:1] * x[:, 0:1] + x[:, d - 1:d] * x[:, d - 1:d])
    first = first - shift_ref[0]
    if d > 2:  # static (trace-time) guard for the pass-through columns
        o_ref[...] = jnp.concatenate([first, x[:, 1:d - 1]], axis=-1)
    else:
        o_ref[...] = first


def _translation_kernel(x_ref, o_ref):
    d = x_ref.shape[-1]
    x = x_ref[...]
    first = x[:, 0:1] + x[:, d - 1:d]
    if d > 2:
        o_ref[...] = jnp.concatenate([first, x[:, 1:d - 1]], axis=-1)
    else:
        o_ref[...] = first


def _transform_call(kernel, points, d_out, extra_inputs=(), extra_specs=()):
    """Run `kernel` over an (N, D) array, tiled along N (sublanes)."""
    n, d = points.shape
    itemsize = jnp.dtype(points.dtype).itemsize
    tile_m = _choose_tile_rows(n, d, d_out, itemsize)
    grid = (pl.cdiv(n, tile_m),)
    return pl.pallas_call(
        kernel,
        out_shape=jax.ShapeDtypeStruct((n, d_out), points.dtype),
        grid=grid,
        in_specs=list(extra_specs) + [pl.BlockSpec((tile_m, d), lambda i: (i, 0))],
        out_specs=pl.BlockSpec((tile_m, d_out), lambda i: (i, 0)),
        compiler_params=pltpu.CompilerParams(
            dimension_semantics=("parallel",)),
    )(*extra_inputs, points)


# ----------------------------- Module wrapper --------------------------------

class PotentialOutput:
    def __init__(self, energy, force=None):
        self.energy = energy
        self.force = force


class ImagesStub:
    """Minimal stand-in for the `images` object BasePotential consumes."""

    def __init__(self, numbers=None, pbc=None, cell=None, tags=None):
        self.numbers = numbers
        self.pbc = pbc
        self.cell = cell
        self.tags = tags


class BasePotentialPallas:
    """JAX/Pallas port of popcornn BasePotential."""

    def __init__(self, images, add_azimuthal_dof=False,
                 add_translation_dof=False, **kwargs):
        self.numbers = images.numbers
        self.n_atoms = len(images.numbers) if images.numbers is not None else None
        self.pbc = images.pbc
        self.cell = images.cell
        self.tag = images.tags
        self.point_option = 0
        self.point_arg = 0
        # Truthiness check kept to match the PyTorch reference
        # (add_azimuthal_dof=0.0 falls back to identity there as well).
        if add_azimuthal_dof:
            self.point_option = 1
            self.point_arg = add_azimuthal_dof
        elif add_translation_dof:
            self.point_option = 2

    def forward(self, points):
        # TODO(synk): BasePotential.forward is abstract in the reference
        # (raises NotImplementedError); subclasses define the energy.
        raise NotImplementedError

    def point_transform(self, points, do_identity=False):
        if self.point_option == 0 or do_identity:
            return self.identity_transform(points)
        elif self.point_option == 1:
            return self.azimuthal_transform(points, self.point_arg)
        elif self.point_option == 2:
            return self.translation_transform(points)
        raise ValueError(f"Unexpected point_option: {self.point_option}")

    def identity_transform(self, points):
        # Identity is a no-op in the reference; bypass Pallas entirely.
        return points

    def azimuthal_transform(self, points, shift):
        shift_arr = jnp.asarray([shift], dtype=points.dtype)
        return _transform_call(
            _azimuthal_kernel, points, points.shape[-1] - 1,
            extra_inputs=(shift_arr,),
            extra_specs=(pl.BlockSpec(memory_space=pltpu.MemorySpace.SMEM),))

    def translation_transform(self, points):
        return _transform_call(
            _translation_kernel, points, points.shape[-1] - 1)


# ----------------------------- reference (plain JAX) -------------------------

def _ref_azimuthal(points, shift):
    first = jnp.sqrt(points[:, 0:1] ** 2 + points[:, -1:] ** 2) - shift
    return jnp.concatenate([first, points[:, 1:-1]], axis=-1)


def _ref_translation(points):
    first = points[:, 0:1] + points[:, -1:]
    return jnp.concatenate([first, points[:, 1:-1]], axis=-1)


if __name__ == "__main__":
    key = jax.random.PRNGKey(0)
    n_points, dim = 16, 8          # small: 16 path points, 8 coordinate dofs
    points = jax.random.normal(key, (n_points, dim), dtype=jnp.float32)

    # Deterministic synthetic "images" metadata (shapes per __init__).
    images = ImagesStub(
        numbers=jnp.arange(1, 5, dtype=jnp.int32),        # 4 atoms
        pbc=jnp.array([True, True, True]),
        cell=jnp.eye(3, dtype=jnp.float32) * 10.0,
        tags=jnp.zeros((4,), dtype=jnp.int32),
    )

    # identity mode (no kernel launch)
    pot_id = BasePotentialPallas(images)
    out_id = jax.block_until_ready(pot_id.point_transform(points))
    assert out_id.shape == (n_points, dim)
    assert jnp.allclose(out_id, points, atol=1e-6)

    # azimuthal mode (shift = 0.5)
    pot_az = BasePotentialPallas(images, add_azimuthal_dof=0.5)
    out_az = jax.block_until_ready(pot_az.point_transform(points))
    assert out_az.shape == (n_points, dim - 1)
    assert jnp.allclose(out_az, _ref_azimuthal(points, 0.5), atol=1e-5)

    # translation mode
    pot_tr = BasePotentialPallas(images, add_translation_dof=True)
    out_tr = jax.block_until_ready(pot_tr.point_transform(points))
    assert out_tr.shape == (n_points, dim - 1)
    assert jnp.allclose(out_tr, _ref_translation(points), atol=1e-6)

    # do_identity override
    out_force_id = jax.block_until_ready(
        pot_az.point_transform(points, do_identity=True))
    assert jnp.allclose(out_force_id, points, atol=1e-6)

    # multi-tile path: N large enough to force several grid steps
    # (row-tile budget for D=8 f32 is 4096 rows -> 10 steps, ragged last).
    key2 = jax.random.PRNGKey(1)
    big_n = 40000
    big_points = jax.random.normal(key2, (big_n, dim), dtype=jnp.float32)
    out_big = jax.block_until_ready(pot_az.point_transform(big_points))
    assert out_big.shape == (big_n, dim - 1)
    assert jnp.allclose(out_big, _ref_azimuthal(big_points, 0.5), atol=1e-5)

    out_big_tr = jax.block_until_ready(pot_tr.point_transform(big_points))
    assert out_big_tr.shape == (big_n, dim - 1)
    assert jnp.allclose(out_big_tr, _ref_translation(big_points), atol=1e-6)

    print("KERNEL_OK")
</pallas_src>

<mosaic_0001>
module attributes {stable_mosaic.version = 11 : i64} {
  func.func @_azimuthal_kernel(%arg0: i32, %arg1: memref<1xf32, #tpu.memory_space<smem>>, %arg2: memref<16x8xf32, #tpu.memory_space<vmem>>, %arg3: memref<16x7xf32, #tpu.memory_space<vmem>>) attributes {dimension_semantics = [#tpu.dimension_semantics<parallel>], iteration_bounds = array<i64: 1>, scalar_prefetch = 0 : i64, scratch_operands = 0 : i64, tpu.core_type = #tpu.core_type<tc>, window_params = [{transform_indices = @transform_0, window_bounds = array<i64: 1>}, {transform_indices = @transform_1, window_bounds = array<i64: 16, 8>}, {transform_indices = @transform_2, window_bounds = array<i64: 16, 7>}]} {
    %c0 = arith.constant 0 : index
    %c0_0 = arith.constant 0 : index
    %0 = vector.load %arg2[%c0, %c0_0] : memref<16x8xf32, #tpu.memory_space<vmem>>, vector<16x8xf32>
    %1 = vector.extract_strided_slice %0 {offsets = [0, 0], sizes = [16, 1], strides = [1, 1]} : vector<16x8xf32> to vector<16x1xf32>
    %2 = vector.extract_strided_slice %0 {offsets = [0, 0], sizes = [16, 1], strides = [1, 1]} : vector<16x8xf32> to vector<16x1xf32>
    %3 = arith.mulf %1, %2 : vector<16x1xf32>
    %4 = vector.extract_strided_slice %0 {offsets = [0, 7], sizes = [16, 1], strides = [1, 1]} : vector<16x8xf32> to vector<16x1xf32>
    %5 = vector.extract_strided_slice %0 {offsets = [0, 7], sizes = [16, 1], strides = [1, 1]} : vector<16x8xf32> to vector<16x1xf32>
    %6 = arith.mulf %4, %5 : vector<16x1xf32>
    %7 = arith.addf %3, %6 : vector<16x1xf32>
    %8 = math.sqrt %7 : vector<16x1xf32>
    %c0_1 = arith.constant 0 : index
    %9 = memref.load %arg1[%c0_1] : memref<1xf32, #tpu.memory_space<smem>>
    %10 = vector.broadcast %9 : f32 to vector<16x1xf32>
    %11 = arith.subf %8, %10 : vector<16x1xf32>
    %12 = vector.extract_strided_slice %0 {offsets = [0, 1], sizes = [16, 6], strides = [1, 1]} : vector<16x8xf32> to vector<16x6xf32>
    %13 = tpu.concatenate %11, %12 in 1 : vector<16x1xf32>, vector<16x6xf32> -> vector<16x7xf32>
    %c0_2 = arith.constant 0 : index
    %c0_3 = arith.constant 0 : index
    %14 = vector.load %arg3[%c0_2, %c0_3] : memref<16x7xf32, #tpu.memory_space<vmem>>, vector<16x7xf32>
    tpu.vector_store %arg3[%c0_2, %c0_3], %13 {strides = array<i32>} : memref<16x7xf32, #tpu.memory_space<vmem>>, vector<16x7xf32>,
    return
  }
  func.func @transform_0(%arg0: i32) -> i32 {
    %c0_i32 = arith.constant 0 : i32
    %c0_i32_0 = arith.constant 0 : i32
    return %c0_i32 : i32
  }
  func.func @transform_1(%arg0: i32) -> (i32, i32) {
    %c0_i32 = arith.constant 0 : i32
    %c0_i32_0 = arith.constant 0 : i32
    return %arg0, %c0_i32 : i32, i32
  }
  func.func @transform_2(%arg0: i32) -> (i32, i32) {
    %c0_i32 = arith.constant 0 : i32
    %c0_i32_0 = arith.constant 0 : i32
    return %arg0, %c0_i32 : i32, i32
  }
}

</mosaic_0001>

<bundles_post_ra>
// kernel: tpu_custom_call.1
= control target key start
LH: loop header
LB: loop body
LE: loop exit
PB: predicated region body
PF: predicated region fallthrough
CT: control target
= control target key end

     0   :  { %s59_s13 = smov 121   ;;  %vm44_vm2 = vcmask 7168   ;;  %vm47_vm3 = vcmask 56320   ;;  %s90_s1 = inlined_call_operand.vmem [shape: f32[16,8], index: 1, kind: input, shape index: {}]   ;;  %s91_s0 = inlined_call_operand.<no memory space> [shape: f32[1], index: 0, kind: input, shape index: {}]   ;;  %s92_s2 = inlined_call_operand.vmem [shape: f32[16,7], index: 2, kind: output, shape index: {}]  }
   0x1   :  { %v12_v0 = vld [vmem:[%s90_s1] sm:$0xff]  ;;  %v13_v1 = vld [vmem:[%s90_s1 + $0x8] sm:$0xff]  ;;  %v41_v11 = vstv %s91_s0 }
   0x2   :  { %v14_v2 = vmul.f32 %v12_v0, %v12_v0  ;;  %v15_v3 = vmul.f32 %v13_v1, %v13_v1 }
   0x4   :  { %18 = vrot.lane.b32.xlu0 %v14_v2, %s59_s13 }
   0x8   :  { %20 = vrot.lane.b32.xlu0 %v15_v3, %s59_s13 }
  0x76   :  { %v19_v4 = vpop.permute.xlu0 %18 }
  0x77   :  { %v24_v5 = vadd.f32 %v19_v4, %v14_v2 }
  0x79   :  { %55 = vrsqrt.f32 %v24_v5  ;;  %vm28_vm0 = vcmp.eq.f32.partialorder %v24_v5, inf  ;;  %v31_v10 = vand.u32 2147483648, %v24_v5  ;;  %vm30_vm1 = vcmp.eq.f32.partialorder %v24_v5, 0.0 }
  0x7a   :  { %v21_v6 = vpop.permute.xlu0 %20 }
  0x7b   :  { %v25_v7 = vadd.f32 %v21_v6, %v15_v3 }
  0x7d   :  { %57 = vrsqrt.f32 %v25_v7  ;;  %vm35_vm4 = vcmp.eq.f32.partialorder %v25_v7, inf  ;;  %v38_v17 = vand.u32 2147483648, %v25_v7  ;;  %vm37_vm5 = vcmp.eq.f32.partialorder %v25_v7, 0.0 }
  0x83   :  { %v56_v8 = vpop.eup %55 }
  0x84   :  { %v27_v9 = vmul.f32 %v56_v8, %v24_v5 }
  0x86   :  { %v29_v12 = vsel %vm28_vm0, %v24_v5, %v27_v9 }
  0x87   :  { %v58_v13 = vpop.eup %57  ;;  %v32_v14 = vsel %vm30_vm1, %v31_v10, %v29_v12 }
  0x88   :  { %v42_v15 = vsub.f32 %v32_v14, %v41_v11  ;;  %v34_v16 = vmul.f32 %v58_v13, %v25_v7 }
  0x8a   :  { %v45_v18 = vsel %vm44_vm2, %v42_v15, %v12_v0  ;;  %v36_v19 = vsel %vm35_vm4, %v25_v7, %v34_v16 }
  0x8b   :  { %48 = vst.msk [vmem:[%s92_s2] sm:$0xff] %vm47_vm3, %v45_v18  ;;  %v39_v20 = vsel %vm37_vm5, %v38_v17, %v36_v19 }
  0x8c   :  { %v43_v21 = vsub.f32 %v39_v20, %v41_v11 }
  0x8e   :  { %v46_v22 = vsel %vm44_vm2, %v43_v21, %v13_v1 }
  0x8f   :  { %49 = vst.msk [vmem:[%s92_s2 + $0x8] sm:$0xff] %vm47_vm3, %v46_v22 }

</bundles_post_ra>
